<compile_context>
chip_gen: v7x
topology: tpu7x:2x2x1
jax: 0.10.0
libtpu: 0.0.40
codegen_flags: <defaults>
</compile_context>

<pallas_src>
import jax
import jax.numpy as jnp
from jax.experimental import pallas as pl
from jax.experimental.pallas import tpu as pltpu

_EPS = 1e-6  # F.pairwise_distance default eps


def contrastive_loss(output1, output2, *, tile_bytes=2 << 20):
    """Pallas TPU implementation of ContrastiveLoss.forward (margin unused)."""
    assert output1.shape == output2.shape
    shape = output1.shape
    D = shape[-1]
    R = 1
    for s in shape[:-1]:
        R *= int(s)
    R = max(R, 1)

    x = output1.reshape(R, D)   # collapse leading dims; identity for 2-D inputs
    y = output2.reshape(R, D)
    inv_rows = 1.0 / float(R)

    # ---- row tiling: ~tile_bytes per input tile, multiple of 8 sublanes ----
    itemsize = jnp.dtype(output1.dtype).itemsize
    row_bytes = max(1, D * itemsize)
    tb_target = max(8, (tile_bytes // row_bytes) // 8 * 8)
    if R <= tb_target:
        tb = R          # single block == full array extent (always legal)
    else:
        tb = tb_target  # multiple of 8 sublanes
    grid = (pl.cdiv(R, tb),)
    needs_mask = (R % tb) != 0  # only the last tile can be partial

    # ---- kernel ------------------------------------------------------------
    def kernel(x_ref, y_ref, loss_ref, acc_ref):
        i = pl.program_id(0)

        @pl.when(i == 0)
        def _init():
            acc_ref[...] = jnp.zeros_like(acc_ref)

        # (tb, D) tile: elementwise diff + square + accumulate (pure VPU).
        d = x_ref[...].astype(jnp.float32) - y_ref[...].astype(jnp.float32) + _EPS
        sq = d * d
        if needs_mask:
            # Mask rows past the true row count (garbage in the partial tile).
            row = jax.lax.broadcasted_iota(jnp.int32, sq.shape, 0)
            sq = jnp.where(row < (R - i * tb), sq, 0.0)
        acc_ref[...] += sq

        @pl.when(i == pl.num_programs(0) - 1)
        def _finalize():
            # Single cross-lane/cross-sublane reduce, then mean over distances.
            loss_ref[0, 0] = jnp.sum(acc_ref[...]) * inv_rows

    out = pl.pallas_call(
        kernel,
        out_shape=jax.ShapeDtypeStruct((1, 1), jnp.float32),
        grid_spec=pltpu.PrefetchScalarGridSpec(
            num_scalar_prefetch=0,
            grid=grid,
            in_specs=[
                pl.BlockSpec((tb, D), lambda i: (i, 0)),
                pl.BlockSpec((tb, D), lambda i: (i, 0)),
            ],
            out_specs=pl.BlockSpec((1, 1), lambda i: (0, 0),
                                   memory_space=pltpu.MemorySpace.SMEM),
            scratch_shapes=[pltpu.VMEM((tb, D), jnp.float32)],
        ),
        compiler_params=pltpu.CompilerParams(
            dimension_semantics=("arbitrary",),   # sequential reduction axis
        ),
    )(x, y)
    return out[0, 0]


def _reference_loss(output1, output2):
    # Exact PyTorch formulation (sqrt then square) for comparison.
    diff = output1.astype(jnp.float32) - output2.astype(jnp.float32) + _EPS
    dist = jnp.sqrt(jnp.sum(diff * diff, axis=-1))
    return jnp.mean(dist * dist)


if __name__ == "__main__":
    # Small shapes consistent with the module: batch=8 embeddings of hidden=32.
    B, D = 8, 32
    key = jax.random.PRNGKey(0)
    k1, k2 = jax.random.split(key)
    o1 = jax.random.normal(k1, (B, D), dtype=jnp.float32)
    o2 = jax.random.normal(k2, (B, D), dtype=jnp.float32)

    loss = contrastive_loss(o1, o2)
    jax.block_until_ready(loss)

    ref = _reference_loss(o1, o2)
    assert jnp.allclose(loss, ref, rtol=1e-5, atol=1e-5), (loss, ref)

    print("KERNEL_OK")
</pallas_src>

<mosaic_0001>
module attributes {stable_mosaic.version = 11 : i64} {
  func.func @kernel(%arg0: i32, %arg1: memref<8x32xf32, #tpu.memory_space<vmem>>, %arg2: memref<8x32xf32, #tpu.memory_space<vmem>>, %arg3: memref<1x1xf32, #tpu.memory_space<smem>>, %arg4: memref<8x32xf32, #tpu.memory_space<vmem>>) attributes {dimension_semantics = [#tpu.dimension_semantics<arbitrary>], iteration_bounds = array<i64: 1>, scalar_prefetch = 0 : i64, scratch_operands = 1 : i64, tpu.core_type = #tpu.core_type<tc>, window_params = [{transform_indices = @transform_0, window_bounds = array<i64: 8, 32>}, {transform_indices = @transform_1, window_bounds = array<i64: 8, 32>}, {transform_indices = @transform_2, window_bounds = array<i64: 1, 1>}]} {
    %c0_i32 = arith.constant 0 : i32
    %0 = arith.cmpi eq, %arg0, %c0_i32 : i32
    %1 = arith.extui %0 : i1 to i32
    %c0_i32_0 = arith.constant 0 : i32
    %2 = arith.cmpi ne, %1, %c0_i32_0 : i32
    scf.if %2 {
      %cst_10 = arith.constant 0.000000e+00 : f32
      %15 = vector.broadcast %cst_10 : f32 to vector<8x32xf32>
      %c0_11 = arith.constant 0 : index
      %c0_12 = arith.constant 0 : index
      %16 = vector.load %arg4[%c0_11, %c0_12] : memref<8x32xf32, #tpu.memory_space<vmem>>, vector<8x32xf32>
      tpu.vector_store %arg4[%c0_11, %c0_12], %15 {strides = array<i32>} : memref<8x32xf32, #tpu.memory_space<vmem>>, vector<8x32xf32>,
    } else {
    }
    %c0 = arith.constant 0 : index
    %c0_1 = arith.constant 0 : index
    %3 = vector.load %arg1[%c0, %c0_1] : memref<8x32xf32, #tpu.memory_space<vmem>>, vector<8x32xf32>
    %c0_2 = arith.constant 0 : index
    %c0_3 = arith.constant 0 : index
    %4 = vector.load %arg2[%c0_2, %c0_3] : memref<8x32xf32, #tpu.memory_space<vmem>>, vector<8x32xf32>
    %5 = arith.subf %3, %4 : vector<8x32xf32>
    %cst = arith.constant 9.99999997E-7 : f32
    %6 = vector.broadcast %cst : f32 to vector<8x32xf32>
    %7 = arith.addf %5, %6 : vector<8x32xf32>
    %8 = arith.mulf %7, %7 : vector<8x32xf32>
    %c0_4 = arith.constant 0 : index
    %c0_5 = arith.constant 0 : index
    %9 = vector.load %arg4[%c0_4, %c0_5] : memref<8x32xf32, #tpu.memory_space<vmem>>, vector<8x32xf32>
    %10 = arith.addf %9, %8 : vector<8x32xf32>
    %c0_6 = arith.constant 0 : index
    %c0_7 = arith.constant 0 : index
    %11 = vector.load %arg4[%c0_6, %c0_7] : memref<8x32xf32, #tpu.memory_space<vmem>>, vector<8x32xf32>
    tpu.vector_store %arg4[%c0_6, %c0_7], %10 {strides = array<i32>} : memref<8x32xf32, #tpu.memory_space<vmem>>, vector<8x32xf32>,
    %c0_i32_8 = arith.constant 0 : i32
    %12 = arith.cmpi eq, %arg0, %c0_i32_8 : i32
    %13 = arith.extui %12 : i1 to i32
    %c0_i32_9 = arith.constant 0 : i32
    %14 = arith.cmpi ne, %13, %c0_i32_9 : i32
    scf.if %14 {
      %c0_10 = arith.constant 0 : index
      %c0_11 = arith.constant 0 : index
      %15 = vector.load %arg4[%c0_10, %c0_11] : memref<8x32xf32, #tpu.memory_space<vmem>>, vector<8x32xf32>
      %16 = vector.shape_cast %15 : vector<8x32xf32> to vector<1x8x32xf32>
      %cst_12 = arith.constant dense<0.000000e+00> : vector<1xf32>
      %17 = vector.multi_reduction <add>, %16, %cst_12 [1, 2] : vector<1x8x32xf32> to vector<1xf32>
      %18 = vector.shape_cast %17 : vector<1xf32> to vector<1x1x1xf32>
      %19 = vector.extract %18[0, 0, 0] : f32 from vector<1x1x1xf32>
      %cst_13 = arith.constant 1.250000e-01 : f32
      %20 = arith.mulf %19, %cst_13 : f32
      %c0_14 = arith.constant 0 : index
      %c0_15 = arith.constant 0 : index
      %21 = memref.load %arg3[%c0_14, %c0_15] : memref<1x1xf32, #tpu.memory_space<smem>>
      memref.store %20, %arg3[%c0_14, %c0_15] : memref<1x1xf32, #tpu.memory_space<smem>>
    } else {
    }
    return
  }
  func.func @transform_0(%arg0: i32) -> (i32, i32) {
    %c0_i32 = arith.constant 0 : i32
    %c0_i32_0 = arith.constant 0 : i32
    return %arg0, %c0_i32 : i32, i32
  }
  func.func @transform_1(%arg0: i32) -> (i32, i32) {
    %c0_i32 = arith.constant 0 : i32
    %c0_i32_0 = arith.constant 0 : i32
    return %arg0, %c0_i32 : i32, i32
  }
  func.func @transform_2(%arg0: i32) -> (i32, i32) {
    %c0_i32 = arith.constant 0 : i32
    %c0_i32_0 = arith.constant 0 : i32
    %c0_i32_1 = arith.constant 0 : i32
    return %c0_i32, %c0_i32_0 : i32, i32
  }
}

</mosaic_0001>

<bundles_post_ra>
// kernel: tpu_custom_call.1
= control target key start
LH: loop header
LB: loop body
LE: loop exit
PB: predicated region body
PF: predicated region fallthrough
CT: control target
= control target key end

     0   :  { %7 = vsyncpa [#allocation4], 0  ;;  %s204_s0 = inlined_call_operand.hbm [shape: f32[8,32], index: 0, kind: input, shape index: {}]   ;;  %s205_s1 = inlined_call_operand.hbm [shape: f32[8,32], index: 1, kind: input, shape index: {}]   ;;  %s206_s2 = inlined_call_operand.hbm [shape: f32[1,1], index: 2, kind: output, shape index: {}]  }
   0x1   :  { %8 = vsyncpa [#allocation7], 0 }
   0x2   :  { %9 = vsyncpa [#allocation5], 0  ;;  %s149_s9 = smov [#allocation3]   ;;  %s150_s11 = smov [#allocation6]  }
   0x3   :  { %s16_s10 = sshll.u32 %s149_s9, 4  ;;  %s26_s12 = sshll.u32 %s150_s11, 4  ;;  %s17_s10 = int_to_ptr.vmem [resolvable:$true] %s16_s10  ;;  %s27_s12 = int_to_ptr.vmem [resolvable:$true] %s26_s12 }
   0x4   :  { %s89_s15 = scalar_lea.hbm %s204_s0, 128 }
   0x5   :  { %p90_p0 = scmp.ne.s32.totalorder %s204_s0, %s89_s15  ;;  %p93_p1 = scmp.lt.u32.totalorder %s89_s15, %s204_s0 }
   0x7   :  { %p95_p2 = pnand %p93_p1, %p90_p0 }
   0x9   :  { %98 = shalt.err (!%p95_p2)
}
   0xa   :  { %s99_s20 = scalar_lea.vmem %s17_s10, 128  ;;  %p104_p4 = scmp.lt.s32.totalorder %s17_s10, %s17_s10 }
   0xb   :  { %p100_p3 = scmp.ne.s32.totalorder %s17_s10, %s99_s20  ;;  %p105_p5 = scmp.lt.s32.totalorder %s99_s20, %s99_s20 }
   0xd   :  { %p106_p6 = por %p105_p5, %p104_p4 }
   0xf   :  { %p107_p7 = pnand %p106_p6, %p100_p3 }
  0x11   :  { %110 = shalt.err (!%p107_p7)
}
  0x12   :  { %19 = dma.hbm_to_vmem [thread:$0]  %s204_s0, 128, %s17_s10, [#allocation4]  }
  0x13   :  { %s111_s25 = scalar_lea.hbm %s205_s1, 128 }
  0x14   :  { %p112_p8 = scmp.ne.s32.totalorder %s205_s1, %s111_s25  ;;  %p115_p9 = scmp.lt.u32.totalorder %s111_s25, %s205_s1 }
  0x16   :  { %p117_p10 = pnand %p115_p9, %p112_p8 }
  0x18   :  { %120 = shalt.err (!%p117_p10)
}
  0x19   :  { %s121_s30 = scalar_lea.vmem %s27_s12, 128  ;;  %p126_p12 = scmp.lt.s32.totalorder %s27_s12, %s27_s12 }
  0x1a   :  { %p122_p11 = scmp.ne.s32.totalorder %s27_s12, %s121_s30  ;;  %p127_p13 = scmp.lt.s32.totalorder %s121_s30, %s121_s30 }
  0x1c   :  { %p128_p0 = por %p127_p13, %p126_p12 }
  0x1e   :  { %p129_p1 = pnand %p128_p0, %p122_p11 }
  0x20   :  { %132 = shalt.err (!%p129_p1)
}
  0x21   :  { %29 = dma.hbm_to_vmem [thread:$0]  %s205_s1, 128, %s27_s12, [#allocation7]  }
  0x22   :  { %143 = dma.done.wait [#allocation4], 128  }
  0x23   :  { %144 = vsyncadd [#allocation4], 4294967168 }
  0x24   :  { %145 = dma.done.wait [#allocation7], 128  }
  0x25   :  { %146 = vsyncadd [#allocation7], 4294967168  ;;  %vm40_vm0 = vcmask 261120   ;;  %v151_v0 = vmov 0.0   ;;  %v42_v1 = vld [vmem:[#allocation3] sm:$0xff]  ;;  %v43_v2 = vld [vmem:[#allocation6] sm:$0xff] }
  0x26   :  { %41 = vst.msk [vmem:[#allocation2] sm:$0xff] %vm40_vm0, %v151_v0  ;;  %v44_v3 = vsub.f32 %v42_v1, %v43_v2  ;;  %s133_s7 = scalar_lea.hbm %s206_s2, 16 }
  0x27   :  { %p134_p2 = scmp.ne.s32.totalorder %s206_s2, %s133_s7  ;;  %p137_p3 = scmp.lt.u32.totalorder %s133_s7, %s206_s2 }
  0x28   :  { %v45_v4 = vadd.f32 1e-06, %v44_v3 }
  0x29   :  { %p139_p4 = pnand %p137_p3, %p134_p2 }
  0x2a   :  { %v46_v6 = vmul.f32 %v45_v4, %v45_v4 }
  0x2d   :  { %v47_v5 = vld [vmem:[#allocation2] sm:$0xff] }
  0x2e   :  { %v48_v7 = vadd.f32 %v47_v5, %v46_v6 }
  0x30   :  { %50 = vst.msk [vmem:[#allocation2] sm:$0xff] %vm40_vm0, %v48_v7 }
  0x37   :  { %v54_v8 = vld [vmem:[#allocation2] sm:$0xff] }
  0x38   :  { %v55_v9 = vsel %vm40_vm0, %v54_v8, 0.0 }
  0x39   :  { %56 = vadd.xlane.f32.xlu0 %v55_v9 }
  0xc6   :  { %v57_v10 = vpop.xlane.xlu0 %56 }
  0xc7   :  { %v58_v11 = vrot.slane %v57_v10, 4 }
  0xc9   :  { %v59_v12 = vadd.f32 %v58_v11, %v57_v10 }
  0xcb   :  { %v60_v13 = vrot.slane %v59_v12, 2 }
  0xcd   :  { %v61_v14 = vadd.f32 %v60_v13, %v59_v12 }
  0xcf   :  { %v62_v15 = vrot.slane %v61_v14, 1 }
  0xd1   :  { %v63_v16 = vadd.f32 %v62_v15, %v61_v14 }
  0xd3   :  { %83 = vpush %v63_v16 }
 0x104   :  { %s84_s1 = spop %83 }
 0x105   :  { %s65_s4 = smul.f32 0.125, %s84_s1 }
 0x107   :  { %67 = sst [smem:[#allocation8]] %s65_s4 }
 0x108   :  { %142 = shalt.err (!%p139_p4)
}
 0x109   :  { %s152_s12 = smov [#allocation8]  }
 0x10a   :  { %75 = dma.smem_to_hbm %s152_s12, 16, %s206_s2, [#allocation5]  }
 0x10b   :  { %147 = dma.done.wait [#allocation5], 16  }
 0x10c   :  { %148 = vsyncadd [#allocation5], 4294967280 }
 0x10d   :  { %79 = sfence }
 0x10e   :  { %80 = vsyncpa [#allocation4], 1 }
 0x10f   :  { %81 = vsyncpa [#allocation7], 1 }
 0x110   :  { %82 = vsyncpa [#allocation5], 1 }

</bundles_post_ra>
